<compile_context>
chip_gen: v7x
topology: tpu7x:2x2x1
jax: 0.10.0
libtpu: 0.0.40
codegen_flags: <defaults>
</compile_context>

<pallas_src>
import jax
import jax.numpy as jnp
from jax.experimental import pallas as pl
from jax.experimental.pallas import tpu as pltpu

_LANES = 128


def _boundary_loss_kernel(pred_ref, mask_ref, out_ref):
    @pl.when(pl.program_id(0) == 0)
    def _():
        out_ref[...] = jnp.zeros_like(out_ref)

    # Load in the native dtype; cast in-kernel (keeps HBM traffic minimal).
    d = pred_ref[...].astype(jnp.float32) - mask_ref[...].astype(jnp.float32)
    out_ref[...] += jnp.sum(d * d)


def _round_up(x, m):
    return ((x + m - 1) // m) * m


def boundary_loss(pred, mask, kernel=None, *, block_rows=2048):
    """BoundaryLoss forward: sum(((pred - inner) - (mask - inner))**2).

    The erosion cancels algebraically, so this equals sum((pred - mask)**2).
    `kernel` is kept only for API parity with the PyTorch module (unused there
    as well).
    """
    del kernel  # unused by the reference module's forward
    total = int(pred.size)
    rows = _round_up(pl.cdiv(total, _LANES), 8)
    block_rows = _round_up(min(block_rows, rows), 8)
    padded_rows = _round_up(rows, block_rows)
    padded_total = padded_rows * _LANES

    def _flat(x):
        x = x.reshape(-1)
        if padded_total != total:
            # zero-pad: padded entries of pred and mask are both 0 -> diff 0.
            x = jnp.pad(x, (0, padded_total - total))
        return x.reshape(padded_rows, _LANES)

    grid = (padded_rows // block_rows,)
    out = pl.pallas_call(
        _boundary_loss_kernel,
        out_shape=jax.ShapeDtypeStruct((1, 1), jnp.float32),
        grid=grid,
        in_specs=[
            pl.BlockSpec((block_rows, _LANES), lambda i: (i, 0)),
            pl.BlockSpec((block_rows, _LANES), lambda i: (i, 0)),
        ],
        out_specs=pl.BlockSpec((1, 1), lambda i: (0, 0)),
        compiler_params=pltpu.CompilerParams(
            # Output block is an accumulator across the (only) grid axis, so
            # it must be sequential.
            dimension_semantics=("arbitrary",),
        ),
    )(_flat(pred), _flat(mask))
    return out[0, 0]


def _boundary_loss_ref(pred, mask):
    """Pure-JAX reference mirroring the PyTorch forward (full erosion path)."""
    inf = jnp.inf
    m = mask
    pad_h = jnp.full_like(m[:, :, :1, :], inf)
    up = jnp.concatenate([pad_h, m[:, :, :-1, :]], axis=2)
    down = jnp.concatenate([m[:, :, 1:, :], pad_h], axis=2)
    p1 = jnp.minimum(jnp.minimum(up, m), down)
    pad_w = jnp.full_like(m[:, :, :, :1], inf)
    left = jnp.concatenate([pad_w, m[:, :, :, :-1]], axis=3)
    right = jnp.concatenate([m[:, :, :, 1:], pad_w], axis=3)
    p2 = jnp.minimum(jnp.minimum(left, m), right)
    inner = jnp.minimum(p1, p2)
    d = (pred - inner) - (mask - inner)
    return jnp.sum(d * d)


if __name__ == "__main__":
    key = jax.random.PRNGKey(0)
    k1, k2, k3, k4 = jax.random.split(key, 4)

    N, C, H, W = 2, 4, 16, 16
    pred = jax.random.uniform(k1, (N, C, H, W), dtype=jnp.float32)
    mask = (jax.random.uniform(k2, (N, C, H, W), dtype=jnp.float32) > 0.5).astype(
        jnp.float32
    )
    # the module's `kernel` argument is unused; pass a dummy for API parity
    dummy_kernel = jnp.ones((3, 3), dtype=jnp.float32)

    loss = jax.block_until_ready(boundary_loss(pred, mask, dummy_kernel))
    ref = _boundary_loss_ref(pred, mask)
    assert jnp.allclose(loss, ref, rtol=1e-5, atol=1e-5), (loss, ref)

    # Odd shape: exercises the zero-padding path and a multi-step accumulator
    # grid (small block_rows forces several grid iterations).
    pred2 = jax.random.uniform(k3, (2, 3, 33, 45), dtype=jnp.float32)
    mask2 = (jax.random.uniform(k4, (2, 3, 33, 45), dtype=jnp.float32) > 0.5).astype(
        jnp.float32
    )
    loss2 = jax.block_until_ready(
        boundary_loss(pred2, mask2, dummy_kernel, block_rows=16)
    )
    ref2 = _boundary_loss_ref(pred2, mask2)
    assert jnp.allclose(loss2, ref2, rtol=1e-5, atol=1e-5), (loss2, ref2)

    print("KERNEL_OK")
</pallas_src>

<mosaic_0001>
module attributes {stable_mosaic.version = 11 : i64} {
  func.func @_boundary_loss_kernel(%arg0: i32, %arg1: memref<16x128xf32, #tpu.memory_space<vmem>>, %arg2: memref<16x128xf32, #tpu.memory_space<vmem>>, %arg3: memref<1x1xf32, #tpu.memory_space<vmem>>) attributes {dimension_semantics = [#tpu.dimension_semantics<arbitrary>], iteration_bounds = array<i64: 1>, scalar_prefetch = 0 : i64, scratch_operands = 0 : i64, tpu.core_type = #tpu.core_type<tc>, window_params = [{transform_indices = @transform_0, window_bounds = array<i64: 16, 128>}, {transform_indices = @transform_1, window_bounds = array<i64: 16, 128>}, {pipeline_mode = #tpu.pipeline_mode<synchronous>, transform_indices = @transform_2, window_bounds = array<i64: 1, 1>}]} {
    %c0_i32 = arith.constant 0 : i32
    %0 = arith.cmpi eq, %arg0, %c0_i32 : i32
    %1 = arith.extui %0 : i1 to i32
    %c0_i32_0 = arith.constant 0 : i32
    %2 = arith.cmpi ne, %1, %c0_i32_0 : i32
    scf.if %2 {
      %cst_8 = arith.constant 0.000000e+00 : f32
      %15 = vector.broadcast %cst_8 : f32 to vector<1x1xf32>
      %c0_9 = arith.constant 0 : index
      %c0_10 = arith.constant 0 : index
      %16 = vector.load %arg3[%c0_9, %c0_10] : memref<1x1xf32, #tpu.memory_space<vmem>>, vector<1x1xf32>
      tpu.vector_store %arg3[%c0_9, %c0_10], %15 {strides = array<i32>} : memref<1x1xf32, #tpu.memory_space<vmem>>, vector<1x1xf32>,
    } else {
    }
    %c0 = arith.constant 0 : index
    %c0_1 = arith.constant 0 : index
    %3 = vector.load %arg1[%c0, %c0_1] : memref<16x128xf32, #tpu.memory_space<vmem>>, vector<16x128xf32>
    %c0_2 = arith.constant 0 : index
    %c0_3 = arith.constant 0 : index
    %4 = vector.load %arg2[%c0_2, %c0_3] : memref<16x128xf32, #tpu.memory_space<vmem>>, vector<16x128xf32>
    %5 = arith.subf %3, %4 : vector<16x128xf32>
    %c0_4 = arith.constant 0 : index
    %c0_5 = arith.constant 0 : index
    %6 = vector.load %arg3[%c0_4, %c0_5] : memref<1x1xf32, #tpu.memory_space<vmem>>, vector<1x1xf32>
    %7 = arith.mulf %5, %5 : vector<16x128xf32>
    %8 = vector.shape_cast %7 : vector<16x128xf32> to vector<1x16x128xf32>
    %cst = arith.constant dense<0.000000e+00> : vector<1xf32>
    %9 = vector.multi_reduction <add>, %8, %cst [1, 2] : vector<1x16x128xf32> to vector<1xf32>
    %10 = vector.shape_cast %9 : vector<1xf32> to vector<1x1x1xf32>
    %11 = vector.extract %10[0, 0, 0] : f32 from vector<1x1x1xf32>
    %12 = vector.broadcast %11 : f32 to vector<1x1xf32>
    %13 = arith.addf %6, %12 : vector<1x1xf32>
    %c0_6 = arith.constant 0 : index
    %c0_7 = arith.constant 0 : index
    %14 = vector.load %arg3[%c0_6, %c0_7] : memref<1x1xf32, #tpu.memory_space<vmem>>, vector<1x1xf32>
    tpu.vector_store %arg3[%c0_6, %c0_7], %13 {strides = array<i32>} : memref<1x1xf32, #tpu.memory_space<vmem>>, vector<1x1xf32>,
    return
  }
  func.func @transform_0(%arg0: i32) -> (i32, i32) {
    %c0_i32 = arith.constant 0 : i32
    %c0_i32_0 = arith.constant 0 : i32
    return %arg0, %c0_i32 : i32, i32
  }
  func.func @transform_1(%arg0: i32) -> (i32, i32) {
    %c0_i32 = arith.constant 0 : i32
    %c0_i32_0 = arith.constant 0 : i32
    return %arg0, %c0_i32 : i32, i32
  }
  func.func @transform_2(%arg0: i32) -> (i32, i32) {
    %c0_i32 = arith.constant 0 : i32
    %c0_i32_0 = arith.constant 0 : i32
    %c0_i32_1 = arith.constant 0 : i32
    return %c0_i32, %c0_i32_0 : i32, i32
  }
}

</mosaic_0001>

<bundles_post_ra>
// kernel: tpu_custom_call.1
= control target key start
LH: loop header
LB: loop body
LE: loop exit
PB: predicated region body
PF: predicated region fallthrough
CT: control target
= control target key end

     0   :  { %7 = vsyncpa [#allocation3], 0  ;;  %s224_s0 = inlined_call_operand.hbm [shape: f32[16,128], index: 0, kind: input, shape index: {}]   ;;  %s225_s1 = inlined_call_operand.hbm [shape: f32[16,128], index: 1, kind: input, shape index: {}]   ;;  %s226_s2 = inlined_call_operand.hbm [shape: f32[1,1], index: 2, kind: output, shape index: {}]  }
   0x1   :  { %8 = vsyncpa [#allocation6], 0 }
   0x2   :  { %9 = vsyncpa [#allocation4], 0  ;;  %s165_s9 = smov [#allocation2]   ;;  %s93_s13 = scalar_lea.hbm %s224_s0, 256 }
   0x3   :  { %s15_s10 = sshll.u32 %s165_s9, 4  ;;  %p94_p0 = scmp.ne.s32.totalorder %s224_s0, %s93_s13  ;;  %s16_s10 = int_to_ptr.vmem [resolvable:$true] %s15_s10 }
   0x4   :  { %p97_p1 = scmp.lt.u32.totalorder %s93_s13, %s224_s0 }
   0x6   :  { %p99_p2 = pnand %p97_p1, %p94_p0 }
   0x8   :  { %102 = shalt.err (!%p99_p2)
}
   0x9   :  { %s103_s18 = scalar_lea.vmem %s16_s10, 256  ;;  %p108_p4 = scmp.lt.s32.totalorder %s16_s10, %s16_s10 }
   0xa   :  { %p104_p3 = scmp.ne.s32.totalorder %s16_s10, %s103_s18  ;;  %p109_p5 = scmp.lt.s32.totalorder %s103_s18, %s103_s18 }
   0xc   :  { %p110_p6 = por %p109_p5, %p108_p4 }
   0xe   :  { %p111_p7 = pnand %p110_p6, %p104_p3 }
  0x10   :  { %114 = shalt.err (!%p111_p7)
}
  0x11   :  { %s166_s19 = smov 128   ;;  %s167_s20 = smov 8  }
  0x12   :  { %21 = dma.hbm_to_vmem [thread:$0]  %s224_s0, 256, %s16_s10, [#allocation3], %s166_s19, %s166_s19, %s167_s20  }
  0x13   :  { %s168_s23 = smov [#allocation5]   ;;  %s115_s27 = scalar_lea.hbm %s225_s1, 256 }
  0x14   :  { %s27_s24 = sshll.u32 %s168_s23, 4  ;;  %p116_p8 = scmp.ne.s32.totalorder %s225_s1, %s115_s27  ;;  %s28_s24 = int_to_ptr.vmem [resolvable:$true] %s27_s24 }
  0x15   :  { %p119_p9 = scmp.lt.u32.totalorder %s115_s27, %s225_s1 }
  0x17   :  { %p121_p10 = pnand %p119_p9, %p116_p8 }
  0x19   :  { %124 = shalt.err (!%p121_p10)
}
  0x1a   :  { %s125_s4 = scalar_lea.vmem %s28_s24, 256  ;;  %p130_p12 = scmp.lt.s32.totalorder %s28_s24, %s28_s24 }
  0x1b   :  { %p126_p11 = scmp.ne.s32.totalorder %s28_s24, %s125_s4  ;;  %p131_p13 = scmp.lt.s32.totalorder %s125_s4, %s125_s4 }
  0x1d   :  { %p132_p0 = por %p131_p13, %p130_p12 }
  0x1f   :  { %p133_p1 = pnand %p132_p0, %p126_p11 }
  0x21   :  { %136 = shalt.err (!%p133_p1)
}
  0x22   :  { %33 = dma.hbm_to_vmem [thread:$0]  %s225_s1, 256, %s28_s24, [#allocation6], %s166_s19, %s166_s19, %s167_s20  }
  0x23   :  { %159 = dma.done.wait [#allocation3], 256  }
  0x24   :  { %160 = vsyncadd [#allocation3], 4294967040 }
  0x25   :  { %161 = dma.done.wait [#allocation6], 256  }
  0x26   :  { %162 = vsyncadd [#allocation6], 4294967040  ;;  %vm44_vm0 = vcmask 0   ;;  %v169_v0 = vmov 0.0   ;;  %v46_v1 = vld [vmem:[#allocation2] sm:$0xff]  ;;  %v47_v2 = vld [vmem:[#allocation2 + $0x8] sm:$0xff] }
  0x27   :  { %45 = vst.msk [vmem:[#allocation7] sm:$0x1] %vm44_vm0, %v169_v0  ;;  %v48_v3 = vld [vmem:[#allocation5] sm:$0xff]  ;;  %v49_v4 = vld [vmem:[#allocation5 + $0x8] sm:$0xff]  ;;  %s170_s1 = smov [#allocation7]  }
  0x28   :  { %v50_v5 = vsub.f32 %v46_v1, %v48_v3  ;;  %v51_v6 = vsub.f32 %v47_v2, %v49_v4  ;;  %s75_s6 = sshll.u32 %s170_s1, 4  ;;  %s76_s6 = int_to_ptr.vmem [resolvable:$true] %s75_s6 }
  0x29   :  { %s137_s8 = scalar_lea.vmem %s76_s6, 16  ;;  %s141_s9 = scalar_lea.vmem %s76_s6, 32 }
  0x2a   :  { %v53_v7 = vmul.f32 %v50_v5, %v50_v5  ;;  %v54_v8 = vmul.f32 %v51_v6, %v51_v6  ;;  %p138_p2 = scmp.ne.s32.totalorder %s76_s6, %s137_s8  ;;  %p142_p3 = scmp.lt.s32.totalorder %s76_s6, %s76_s6 }
  0x2b   :  { %p143_p4 = scmp.lt.s32.totalorder %s141_s9, %s137_s8 }
  0x2c   :  { %v55_v9 = vadd.f32 %v54_v8, %v53_v7 }
  0x2d   :  { %p144_p5 = por %p143_p4, %p142_p3 }
  0x2e   :  { %56 = vadd.xlane.f32.xlu0 %v55_v9  ;;  %v52_v17 = vld [vmem:[#allocation7] sm:$0x1] }
  0x2f   :  { %p145_p6 = pnand %p144_p5, %p138_p2 }
  0xbb   :  { %v57_v10 = vpop.xlane.xlu0 %56 }
  0xbc   :  { %v58_v11 = vrot.slane %v57_v10, 4 }
  0xbe   :  { %v59_v12 = vadd.f32 %v58_v11, %v57_v10 }
  0xc0   :  { %v60_v13 = vrot.slane %v59_v12, 2 }
  0xc2   :  { %v61_v14 = vadd.f32 %v60_v13, %v59_v12 }
  0xc4   :  { %v62_v15 = vrot.slane %v61_v14, 1 }
  0xc6   :  { %v63_v16 = vadd.f32 %v62_v15, %v61_v14 }
  0xc8   :  { %85 = vpush %v63_v16 }
  0xf9   :  { %s86_s7 = spop %85 }
  0xfa   :  { %v65_v18 = vstv %s86_s7 }
  0xfb   :  { %v66_v19 = vadd.f32 %v65_v18, %v52_v17 }
  0xfd   :  { %68 = vst.msk [vmem:[#allocation7] sm:$0x1] %vm44_vm0, %v66_v19 }
  0xfe   :  { %148 = shalt.err (!%p145_p6)
}
  0xff   :  { %s149_s12 = scalar_lea.hbm %s226_s2, 16 }
 0x100   :  { %p150_p7 = scmp.ne.s32.totalorder %s226_s2, %s149_s12  ;;  %p153_p8 = scmp.lt.u32.totalorder %s149_s12, %s226_s2 }
 0x102   :  { %p155_p9 = pnand %p153_p8, %p150_p7 }
 0x104   :  { %158 = shalt.err (!%p155_p9)
}
 0x105   :  { %78 = dma.vmem_to_hbm [thread:$0]  %s76_s6, 16, %s226_s2, [#allocation4]  }
 0x106   :  { %163 = dma.done.wait [#allocation4], 16  }
 0x107   :  { %164 = vsyncadd [#allocation4], 4294967280 }
 0x108   :  { %82 = vsyncpa [#allocation3], 1 }
 0x109   :  { %83 = vsyncpa [#allocation6], 1 }
 0x10a   :  { %84 = vsyncpa [#allocation4], 1 }

</bundles_post_ra>
